<compile_context>
chip_gen: v5e
topology: v5e:2x2
jax: 0.10.0
libtpu: 0.0.40
codegen_flags: <defaults>
</compile_context>

<pallas_src>
import jax
import jax.numpy as jnp
from jax.experimental import pallas as pl
from jax.experimental.pallas import tpu as pltpu

EPS = 1e-5                 # PyTorch BatchNorm1d default eps
NEG_INF = -1e30            # big-negative for masked log-softmax lanes
N_CLASSES = 10
N_FEATURES = 28 * 28
LANE = 128                 # lane-padded width for weights / output


def _make_kernel(n_valid, n_rows):
    """Build the kernel for a static (true batch, padded batch) pair."""
    inv_n = 1.0 / float(n_valid)

    def _bn(h, row_mask):
        # BatchNorm1d(affine=False), training mode: biased batch variance,
        # one-pass stats, padded rows excluded via row_mask.
        hm = h * row_mask
        mean = jnp.sum(hm, axis=0, keepdims=True) * inv_n
        ex2 = jnp.sum(hm * hm, axis=0, keepdims=True) * inv_n
        var = ex2 - mean * mean
        return (h - mean) * jax.lax.rsqrt(var + EPS)

    def kernel(x_ref, w1_ref, b1_ref, w2_ref, b2_ref, w3_ref, b3_ref, o_ref):
        x = x_ref[...]                                    # (Bp, 784)  bf16
        w1 = w1_ref[...]                                  # (784, 128) bf16
        w2 = w2_ref[...]                                  # (128, 128) bf16
        w3 = w3_ref[...]                                  # (128, 128) bf16
        b1 = b1_ref[...]                                  # (1, 128)   f32
        b2 = b2_ref[...]
        b3 = b3_ref[...]

        if n_rows == n_valid:
            row_mask = jnp.float32(1.0)                   # no padded rows
        else:
            rows = jax.lax.broadcasted_iota(jnp.int32, (n_rows, 1), 0)
            row_mask = (rows < n_valid).astype(jnp.float32)

        # Linear(784, 10)  (bf16 operands, f32 accumulate)
        h = jnp.dot(x, w1, preferred_element_type=jnp.float32) + b1
        # BatchNorm1d(10, affine=False), training-mode batch stats
        h = _bn(h, row_mask)
        # ReLU
        h = jnp.maximum(h, 0.0)

        # Linear(10, 10)
        h = jnp.dot(h.astype(jnp.bfloat16), w2,
                    preferred_element_type=jnp.float32) + b2
        # BatchNorm1d(10, affine=False)
        h = _bn(h, row_mask)

        # Linear(10, 10)
        h = jnp.dot(h.astype(jnp.bfloat16), w3,
                    preferred_element_type=jnp.float32) + b3

        # LogSoftmax over dim=1, restricted to the first N_CLASSES lanes.
        cols = jax.lax.broadcasted_iota(jnp.int32, (n_rows, LANE), 1)
        valid = cols < N_CLASSES
        hm = jnp.where(valid, h, NEG_INF)
        m = jnp.max(hm, axis=1, keepdims=True)
        e = jnp.where(valid, jnp.exp(hm - m), 0.0)
        lse = jnp.log(jnp.sum(e, axis=1, keepdims=True))
        o_ref[...] = hm - m - lse                         # lane-dense store

    return kernel


def _prep_params(params):
    """Lane-pad weights/biases to 128 output columns; weights -> bf16."""
    w1, b1, w2, b2, w3, b3 = params
    pad_c = LANE - N_CLASSES
    pad_r = LANE - N_CLASSES
    w1p = jnp.pad(w1, ((0, 0), (0, pad_c))).astype(jnp.bfloat16)        # (784,128)
    w2p = jnp.pad(w2, ((0, pad_r), (0, pad_c))).astype(jnp.bfloat16)    # (128,128)
    w3p = jnp.pad(w3, ((0, pad_r), (0, pad_c))).astype(jnp.bfloat16)    # (128,128)
    b1p = jnp.pad(b1, ((0, 0), (0, pad_c))).astype(jnp.float32)         # (1,128)
    b2p = jnp.pad(b2, ((0, 0), (0, pad_c))).astype(jnp.float32)
    b3p = jnp.pad(b3, ((0, 0), (0, pad_c))).astype(jnp.float32)
    return w1p, b1p, w2p, b2p, w3p, b3p


def mnist_forward(x_nchw, params):
    """x_nchw: (B, 1, 28, 28) float32. Returns (B, 10) log-probs."""
    B = x_nchw.shape[0]
    Bp = ((B + 7) // 8) * 8                         # sublane-align the batch
    x = x_nchw.reshape(B, N_FEATURES).astype(jnp.bfloat16)   # nn.Flatten(1,3)
    if Bp != B:
        x = jnp.pad(x, ((0, Bp - B), (0, 0)))
    w1p, b1p, w2p, b2p, w3p, b3p = _prep_params(params)

    out = pl.pallas_call(
        _make_kernel(B, Bp),
        out_shape=jax.ShapeDtypeStruct((Bp, LANE), jnp.float32),
        in_specs=[
            pl.BlockSpec(memory_space=pltpu.VMEM),  # x   (Bp, 784)  bf16
            pl.BlockSpec(memory_space=pltpu.VMEM),  # w1  (784, 128) bf16
            pl.BlockSpec(memory_space=pltpu.VMEM),  # b1  (1, 128)   f32
            pl.BlockSpec(memory_space=pltpu.VMEM),  # w2  (128, 128) bf16
            pl.BlockSpec(memory_space=pltpu.VMEM),  # b2  (1, 128)   f32
            pl.BlockSpec(memory_space=pltpu.VMEM),  # w3  (128, 128) bf16
            pl.BlockSpec(memory_space=pltpu.VMEM),  # b3  (1, 128)   f32
        ],
        out_specs=pl.BlockSpec(memory_space=pltpu.VMEM),
    )(x, w1p, b1p, w2p, b2p, w3p, b3p)

    return out[:B, :N_CLASSES]


def init_params(key):
    """Deterministic init mirroring nn.Linear default (U(-1/sqrt(fan_in), +))."""
    ks = jax.random.split(key, 6)

    def lin(kw, kb, fan_in, fan_out):
        bound = 1.0 / (fan_in ** 0.5)
        w = jax.random.uniform(kw, (fan_in, fan_out), jnp.float32, -bound, bound)
        b = jax.random.uniform(kb, (1, fan_out), jnp.float32, -bound, bound)
        return w, b

    w1, b1 = lin(ks[0], ks[1], N_FEATURES, N_CLASSES)
    w2, b2 = lin(ks[2], ks[3], N_CLASSES, N_CLASSES)
    w3, b3 = lin(ks[4], ks[5], N_CLASSES, N_CLASSES)
    return (w1, b1, w2, b2, w3, b3)


def _batchnorm_train_ref(h):
    mean = jnp.mean(h, axis=0, keepdims=True)
    var = jnp.mean((h - mean) ** 2, axis=0, keepdims=True)
    return (h - mean) * jax.lax.rsqrt(var + EPS)


def reference_forward(x_nchw, params):
    """Pure-JAX reference using the same bf16-operand / f32-accumulate policy."""
    w1, b1, w2, b2, w3, b3 = params
    B = x_nchw.shape[0]
    x = x_nchw.reshape(B, N_FEATURES).astype(jnp.bfloat16)
    h = jnp.dot(x, w1.astype(jnp.bfloat16),
                preferred_element_type=jnp.float32) + b1
    h = _batchnorm_train_ref(h)
    h = jnp.maximum(h, 0.0)
    h = jnp.dot(h.astype(jnp.bfloat16), w2.astype(jnp.bfloat16),
                preferred_element_type=jnp.float32) + b2
    h = _batchnorm_train_ref(h)
    h = jnp.dot(h.astype(jnp.bfloat16), w3.astype(jnp.bfloat16),
                preferred_element_type=jnp.float32) + b3
    return jax.nn.log_softmax(h, axis=1)


if __name__ == "__main__":
    key = jax.random.PRNGKey(0)
    k_x, k_p = jax.random.split(key)
    params = init_params(k_p)

    # Case 1: batch already a multiple of 8 (matches original test).
    B = 8
    x = jax.random.normal(k_x, (B, 1, 28, 28), dtype=jnp.float32)
    out = jax.block_until_ready(mnist_forward(x, params))
    ref = reference_forward(x, params)
    assert out.shape == (B, N_CLASSES)
    assert jnp.allclose(out, ref, atol=2e-3, rtol=2e-3)

    # Case 2: ragged batch exercising the row-mask path (padded to 8 rows).
    B2 = 6
    x2 = x[:B2]
    out2 = jax.block_until_ready(mnist_forward(x2, params))
    ref2 = reference_forward(x2, params)
    assert out2.shape == (B2, N_CLASSES)
    assert jnp.allclose(out2, ref2, atol=2e-3, rtol=2e-3)

    print("KERNEL_OK")
</pallas_src>

<mosaic_0001>
module attributes {stable_mosaic.version = 11 : i64} {
  func.func @kernel(%arg0: memref<8x784xbf16, #tpu.memory_space<vmem>>, %arg1: memref<784x128xbf16, #tpu.memory_space<vmem>>, %arg2: memref<1x128xf32, #tpu.memory_space<vmem>>, %arg3: memref<128x128xbf16, #tpu.memory_space<vmem>>, %arg4: memref<1x128xf32, #tpu.memory_space<vmem>>, %arg5: memref<128x128xbf16, #tpu.memory_space<vmem>>, %arg6: memref<1x128xf32, #tpu.memory_space<vmem>>, %arg7: memref<8x128xf32, #tpu.memory_space<vmem>>) attributes {dimension_semantics = [], scalar_prefetch = 0 : i64, scratch_operands = 0 : i64, tpu.core_type = #tpu.core_type<tc>} {
    %c0 = arith.constant 0 : index
    %c0_0 = arith.constant 0 : index
    %0 = vector.load %arg0[%c0, %c0_0] : memref<8x784xbf16, #tpu.memory_space<vmem>>, vector<8x784xbf16>
    %c0_1 = arith.constant 0 : index
    %c0_2 = arith.constant 0 : index
    %1 = vector.load %arg1[%c0_1, %c0_2] : memref<784x128xbf16, #tpu.memory_space<vmem>>, vector<784x128xbf16>
    %c0_3 = arith.constant 0 : index
    %c0_4 = arith.constant 0 : index
    %2 = vector.load %arg3[%c0_3, %c0_4] : memref<128x128xbf16, #tpu.memory_space<vmem>>, vector<128x128xbf16>
    %c0_5 = arith.constant 0 : index
    %c0_6 = arith.constant 0 : index
    %3 = vector.load %arg5[%c0_5, %c0_6] : memref<128x128xbf16, #tpu.memory_space<vmem>>, vector<128x128xbf16>
    %c0_7 = arith.constant 0 : index
    %c0_8 = arith.constant 0 : index
    %4 = vector.load %arg2[%c0_7, %c0_8] : memref<1x128xf32, #tpu.memory_space<vmem>>, vector<1x128xf32>
    %c0_9 = arith.constant 0 : index
    %c0_10 = arith.constant 0 : index
    %5 = vector.load %arg4[%c0_9, %c0_10] : memref<1x128xf32, #tpu.memory_space<vmem>>, vector<1x128xf32>
    %c0_11 = arith.constant 0 : index
    %c0_12 = arith.constant 0 : index
    %6 = vector.load %arg6[%c0_11, %c0_12] : memref<1x128xf32, #tpu.memory_space<vmem>>, vector<1x128xf32>
    %cst = arith.constant dense<0.000000e+00> : vector<8x128xf32>
    %7 = tpu.matmul %0, %1, %cst {dimension_numbers = #tpu.dot_dimension_numbers<[1], [0], [0], [1], [0, 0, 1, 1], [], []>} : vector<8x784xbf16>, vector<784x128xbf16>, vector<8x128xf32> -> vector<8x128xf32>
    %8 = vector.broadcast %4 : vector<1x128xf32> to vector<8x128xf32>
    %9 = arith.addf %7, %8 : vector<8x128xf32>
    %cst_13 = arith.constant 1.000000e+00 : f32
    %10 = vector.broadcast %cst_13 : f32 to vector<8x128xf32>
    %11 = arith.mulf %9, %10 : vector<8x128xf32>
    %cst_14 = arith.constant dense<0.000000e+00> : vector<128xf32>
    %12 = vector.multi_reduction <add>, %11, %cst_14 [0] : vector<8x128xf32> to vector<128xf32>
    %13 = vector.shape_cast %12 : vector<128xf32> to vector<1x128xf32>
    %cst_15 = arith.constant 1.250000e-01 : f32
    %14 = vector.broadcast %cst_15 : f32 to vector<1x128xf32>
    %15 = arith.mulf %13, %14 : vector<1x128xf32>
    %16 = arith.mulf %11, %11 : vector<8x128xf32>
    %cst_16 = arith.constant dense<0.000000e+00> : vector<128xf32>
    %17 = vector.multi_reduction <add>, %16, %cst_16 [0] : vector<8x128xf32> to vector<128xf32>
    %18 = vector.shape_cast %17 : vector<128xf32> to vector<1x128xf32>
    %cst_17 = arith.constant 1.250000e-01 : f32
    %19 = vector.broadcast %cst_17 : f32 to vector<1x128xf32>
    %20 = arith.mulf %18, %19 : vector<1x128xf32>
    %21 = arith.mulf %15, %15 : vector<1x128xf32>
    %22 = arith.subf %20, %21 : vector<1x128xf32>
    %23 = vector.broadcast %15 : vector<1x128xf32> to vector<8x128xf32>
    %24 = arith.subf %9, %23 : vector<8x128xf32>
    %cst_18 = arith.constant 9.99999974E-6 : f32
    %25 = vector.broadcast %cst_18 : f32 to vector<1x128xf32>
    %26 = arith.addf %22, %25 : vector<1x128xf32>
    %27 = math.rsqrt %26 : vector<1x128xf32>
    %28 = vector.broadcast %27 : vector<1x128xf32> to vector<8x128xf32>
    %29 = arith.mulf %24, %28 : vector<8x128xf32>
    %cst_19 = arith.constant 0.000000e+00 : f32
    %30 = vector.broadcast %cst_19 : f32 to vector<8x128xf32>
    %31 = arith.maximumf %29, %30 : vector<8x128xf32>
    %32 = arith.truncf %31 : vector<8x128xf32> to vector<8x128xbf16>
    %cst_20 = arith.constant dense<0.000000e+00> : vector<8x128xf32>
    %33 = tpu.matmul %32, %2, %cst_20 {dimension_numbers = #tpu.dot_dimension_numbers<[1], [0], [0], [1], [0, 0, 1, 1], [], []>} : vector<8x128xbf16>, vector<128x128xbf16>, vector<8x128xf32> -> vector<8x128xf32>
    %34 = vector.broadcast %5 : vector<1x128xf32> to vector<8x128xf32>
    %35 = arith.addf %33, %34 : vector<8x128xf32>
    %cst_21 = arith.constant 1.000000e+00 : f32
    %36 = vector.broadcast %cst_21 : f32 to vector<8x128xf32>
    %37 = arith.mulf %35, %36 : vector<8x128xf32>
    %cst_22 = arith.constant dense<0.000000e+00> : vector<128xf32>
    %38 = vector.multi_reduction <add>, %37, %cst_22 [0] : vector<8x128xf32> to vector<128xf32>
    %39 = vector.shape_cast %38 : vector<128xf32> to vector<1x128xf32>
    %cst_23 = arith.constant 1.250000e-01 : f32
    %40 = vector.broadcast %cst_23 : f32 to vector<1x128xf32>
    %41 = arith.mulf %39, %40 : vector<1x128xf32>
    %42 = arith.mulf %37, %37 : vector<8x128xf32>
    %cst_24 = arith.constant dense<0.000000e+00> : vector<128xf32>
    %43 = vector.multi_reduction <add>, %42, %cst_24 [0] : vector<8x128xf32> to vector<128xf32>
    %44 = vector.shape_cast %43 : vector<128xf32> to vector<1x128xf32>
    %cst_25 = arith.constant 1.250000e-01 : f32
    %45 = vector.broadcast %cst_25 : f32 to vector<1x128xf32>
    %46 = arith.mulf %44, %45 : vector<1x128xf32>
    %47 = arith.mulf %41, %41 : vector<1x128xf32>
    %48 = arith.subf %46, %47 : vector<1x128xf32>
    %49 = vector.broadcast %41 : vector<1x128xf32> to vector<8x128xf32>
    %50 = arith.subf %35, %49 : vector<8x128xf32>
    %cst_26 = arith.constant 9.99999974E-6 : f32
    %51 = vector.broadcast %cst_26 : f32 to vector<1x128xf32>
    %52 = arith.addf %48, %51 : vector<1x128xf32>
    %53 = math.rsqrt %52 : vector<1x128xf32>
    %54 = vector.broadcast %53 : vector<1x128xf32> to vector<8x128xf32>
    %55 = arith.mulf %50, %54 : vector<8x128xf32>
    %56 = arith.truncf %55 : vector<8x128xf32> to vector<8x128xbf16>
    %cst_27 = arith.constant dense<0.000000e+00> : vector<8x128xf32>
    %57 = tpu.matmul %56, %3, %cst_27 {dimension_numbers = #tpu.dot_dimension_numbers<[1], [0], [0], [1], [0, 0, 1, 1], [], []>} : vector<8x128xbf16>, vector<128x128xbf16>, vector<8x128xf32> -> vector<8x128xf32>
    %58 = vector.broadcast %6 : vector<1x128xf32> to vector<8x128xf32>
    %59 = arith.addf %57, %58 : vector<8x128xf32>
    %60 = tpu.iota {dimensions = array<i32: 1>} : vector<8x128xi32>
    %c10_i32 = arith.constant 10 : i32
    %61 = vector.broadcast %c10_i32 : i32 to vector<8x128xi32>
    %62 = arith.cmpi slt, %60, %61 : vector<8x128xi32>
    %cst_28 = arith.constant -1.000000e+30 : f32
    %63 = vector.broadcast %cst_28 : f32 to vector<8x128xf32>
    %64 = arith.select %62, %59, %63 : vector<8x128xi1>, vector<8x128xf32>
    %cst_29 = arith.constant dense<0xFF800000> : vector<8xf32>
    %65 = vector.multi_reduction <maximumf>, %64, %cst_29 [1] : vector<8x128xf32> to vector<8xf32>
    %66 = vector.shape_cast %65 : vector<8xf32> to vector<8x1xf32>
    %67 = vector.broadcast %66 : vector<8x1xf32> to vector<8x128xf32>
    %68 = arith.subf %64, %67 : vector<8x128xf32>
    %69 = math.exp %68 : vector<8x128xf32>
    %cst_30 = arith.constant 0.000000e+00 : f32
    %70 = vector.broadcast %cst_30 : f32 to vector<8x128xf32>
    %71 = arith.select %62, %69, %70 : vector<8x128xi1>, vector<8x128xf32>
    %cst_31 = arith.constant dense<0.000000e+00> : vector<8xf32>
    %72 = vector.multi_reduction <add>, %71, %cst_31 [1] : vector<8x128xf32> to vector<8xf32>
    %73 = vector.shape_cast %72 : vector<8xf32> to vector<8x1xf32>
    %74 = math.log %73 : vector<8x1xf32>
    %75 = vector.broadcast %66 : vector<8x1xf32> to vector<8x128xf32>
    %76 = arith.subf %64, %75 : vector<8x128xf32>
    %77 = vector.broadcast %74 : vector<8x1xf32> to vector<8x128xf32>
    %78 = arith.subf %76, %77 : vector<8x128xf32>
    %c0_32 = arith.constant 0 : index
    %c0_33 = arith.constant 0 : index
    %79 = vector.load %arg7[%c0_32, %c0_33] : memref<8x128xf32, #tpu.memory_space<vmem>>, vector<8x128xf32>
    tpu.vector_store %arg7[%c0_32, %c0_33], %78 {strides = array<i32>} : memref<8x128xf32, #tpu.memory_space<vmem>>, vector<8x128xf32>,
    return
  }
}

</mosaic_0001>

<bundles_post_ra>
// kernel: tpu_custom_call.1
= control target key start
LH: loop header
LB: loop body
LE: loop exit
PB: predicated region body
PF: predicated region fallthrough
CT: control target
= control target key end

     0   :  { %12 = vsyncpa [#allocation3], 0  ;;  %s1411_s0 = inlined_call_operand.hbm [shape: bf16[8,784], index: 0, kind: input, shape index: {}]   ;;  %s1412_s1 = inlined_call_operand.hbm [shape: bf16[784,128], index: 1, kind: input, shape index: {}]   ;;  %s1413_s2 = inlined_call_operand.vmem [shape: f32[1,128], index: 2, kind: input, shape index: {}]   ;;  %s1414_s3 = inlined_call_operand.hbm [shape: bf16[128,128], index: 3, kind: input, shape index: {}]   ;;  %s1415_s4 = inlined_call_operand.vmem [shape: f32[1,128], index: 4, kind: input, shape index: {}]   ;;  %s1416_s5 = inlined_call_operand.hbm [shape: bf16[128,128], index: 5, kind: input, shape index: {}]   ;;  %s1417_s6 = inlined_call_operand.vmem [shape: f32[1,128], index: 6, kind: input, shape index: {}]   ;;  %s1418_s7 = inlined_call_operand.hbm [shape: f32[8,128], index: 7, kind: output, shape index: {}]  }
   0x1   :  { %13 = vsyncpa [#allocation6], 0 }
   0x2   :  { %14 = vsyncpa [#allocation9], 0  ;;  %s31_s26 = sshll.u32 %s1412_s1, 4  ;;  %s32_s26 = int_to_ptr.hbm [resolvable:$true] %s31_s26 }
   0x3   :  { %15 = vsyncpa [#allocation4], 0  ;;  %s1340_s27 = smov [#allocation5]   ;;  %s21_s8 = sshll.u32 %s1411_s0, 4  ;;  %s22_s8 = int_to_ptr.hbm [resolvable:$true] %s21_s8 }
   0x4   :  { %s33_s28 = sshll.u32 %s1340_s27, 4  ;;  %s1341_s9 = smov 64   ;;  %s34_s28 = int_to_ptr.vmem [resolvable:$true] %s33_s28 }
   0x5   :  { %s1342_s10 = smov 4   ;;  %s1343_s11 = smov [#allocation2]  }
   0x6   :  { %39 = dma.hbm_to_vmem [thread:$0]  %s32_s26, 6272, %s34_s28, [#allocation6], %s1341_s9, %s1341_s9, %s1342_s10  }
   0x7   :  { %s23_s12 = sshll.u32 %s1343_s11, 4  ;;  %s46_s15 = sshll.u32 %s1414_s3, 4  ;;  %s24_s12 = int_to_ptr.vmem [resolvable:$true] %s23_s12  ;;  %s47_s15 = int_to_ptr.hbm [resolvable:$true] %s46_s15 }
   0x8   :  { %26 = dma.hbm_to_vmem [thread:$0]  %s22_s8, 448, %s24_s12, [#allocation3]  }
   0x9   :  { %s61_s17 = sshll.u32 %s1416_s5, 4  ;;  %s1344_s18 = smov [#allocation7]   ;;  %s62_s17 = int_to_ptr.hbm [resolvable:$true] %s61_s17 }
   0xa   :  { %s48_s19 = sshll.u32 %s1344_s18, 4  ;;  %s1345_s0 = smov [#allocation8]   ;;  %s49_s19 = int_to_ptr.vmem [resolvable:$true] %s48_s19 }
   0xb   :  { %54 = dma.hbm_to_vmem [thread:$0]  %s47_s15, 1024, %s49_s19, [#allocation6], %s1341_s9, %s1341_s9, %s1342_s10  }
   0xc   :  { %s63_s20 = sshll.u32 %s1345_s0, 4  ;;  %s64_s20 = int_to_ptr.vmem [resolvable:$true] %s63_s20 }
   0xd   :  { %69 = dma.hbm_to_vmem [thread:$0]  %s62_s17, 1024, %s64_s20, [#allocation9], %s1341_s9, %s1341_s9, %s1342_s10  }
   0xe   :  { %1332 = dma.done.wait [#allocation3], 448  }
   0xf   :  { %1333 = vsyncadd [#allocation3], 4294966848 }
  0x10   :  { %1334 = dma.done.wait [#allocation6], 7296  }
  0x11   :  { %1335 = vsyncadd [#allocation6], 4294960000 }
  0x12   :  { %1336 = dma.done.wait [#allocation9], 1024  }
  0x13   :  { %1337 = vsyncadd [#allocation9], 4294966272  ;;  %v1136_v0 = vld [vmem:[#allocation5 + $0x38] sm:$0xff]  ;;  %v1135_v3 = vld [vmem:[#allocation5 + $0x30] sm:$0xff]  ;;  %vm547_vm0 = vcmask 130048   ;;  %s1346_s23 = smov [#allocation10]  }
  0x14   :  { %v1144_v1 = vld [vmem:[#allocation5 + $0x78] sm:$0xff]  ;;  %551 = vmatpush.bf16.msra.mxu0 %v1136_v0  ;;  %v1143_v4 = vld [vmem:[#allocation5 + $0x70] sm:$0xff]  ;;  %v1134_v8 = vld [vmem:[#allocation5 + $0x28] sm:$0xff]  ;;  %s854_s24 = sshll.u32 %s1346_s23, 4  ;;  %s856_s26 = sshll.u32 %s1418_s7, 4  ;;  %s855_s24 = int_to_ptr.vmem [resolvable:$true] %s854_s24  ;;  %s857_s26 = int_to_ptr.hbm [resolvable:$true] %s856_s26 }
  0x15   :  { %v1152_v2 = vld [vmem:[#allocation5 + $0xb8] sm:$0xff]  ;;  %564 = vmatpush.bf16.msra.mxu1 %v1144_v1  ;;  %v1151_v5 = vld [vmem:[#allocation5 + $0xb0] sm:$0xff]  ;;  %v1142_v9 = vld [vmem:[#allocation5 + $0x68] sm:$0xff] }
  0x16   :  { %577 = vmatpush.bf16.msra.mxu2 %v1152_v2  ;;  %v1160_v6 = vld [vmem:[#allocation5 + $0xf8] sm:$0xff]  ;;  %v1159_v7 = vld [vmem:[#allocation5 + $0xf0] sm:$0xff]  ;;  %v1150_v10 = vld [vmem:[#allocation5 + $0xa8] sm:$0xff] }
  0x17   :  { %590 = vmatpush.bf16.msra.mxu3 %v1160_v6  ;;  %v1158_v11 = vld [vmem:[#allocation5 + $0xe8] sm:$0xff]  ;;  %v1133_v12 = vld [vmem:[#allocation5 + $0x20] sm:$0xff]  ;;  %v1132_v16 = vld [vmem:[#allocation5 + $0x18] sm:$0xff] }
  0x18   :  { %552 = vmatpush.bf16.msra.mxu0 %v1135_v3  ;;  %v1141_v13 = vld [vmem:[#allocation5 + $0x60] sm:$0xff]  ;;  %v1140_v17 = vld [vmem:[#allocation5 + $0x58] sm:$0xff]  ;;  %v1131_v20 = vld [vmem:[#allocation5 + $0x10] sm:$0xff] }
  0x19   :  { %565 = vmatpush.bf16.msra.mxu1 %v1143_v4  ;;  %v1149_v14 = vld [vmem:[#allocation5 + $0xa0] sm:$0xff]  ;;  %v1148_v18 = vld [vmem:[#allocation5 + $0x98] sm:$0xff]  ;;  %v1139_v21 = vld [vmem:[#allocation5 + $0x50] sm:$0xff] }
  0x1a   :  { %578 = vmatpush.bf16.msra.mxu2 %v1151_v5  ;;  %v1157_v15 = vld [vmem:[#allocation5 + $0xe0] sm:$0xff]  ;;  %v1156_v19 = vld [vmem:[#allocation5 + $0xd8] sm:$0xff]  ;;  %v1147_v22 = vld [vmem:[#allocation5 + $0x90] sm:$0xff] }
  0x1b   :  { %591 = vmatpush.bf16.msra.mxu3 %v1159_v7  ;;  %v1155_v23 = vld [vmem:[#allocation5 + $0xd0] sm:$0xff]  ;;  %v1130_v24 = vld [vmem:[#allocation5 + $0x8] sm:$0xff]  ;;  %v1129_v32 = vld [vmem:[#allocation5] sm:$0xff] }
  0x1c   :  { %553 = vmatpush.bf16.msra.mxu0 %v1134_v8  ;;  %v1138_v25 = vld [vmem:[#allocation5 + $0x48] sm:$0xff]  ;;  %v1137_v33 = vld [vmem:[#allocation5 + $0x40] sm:$0xff]  ;;  %v1168_v34 = vld [vmem:[#allocation5 + $0x138] sm:$0xff] }
  0x1d   :  { %566 = vmatpush.bf16.msra.mxu1 %v1142_v9  ;;  %v89_v26 = vld [vmem:[#allocation2] sm:$0xff]  ;;  %v90_v28 = vld [vmem:[#allocation2 + $0x8] sm:$0xff]  ;;  %v1176_v35 = vld [vmem:[#allocation5 + $0x178] sm:$0xff] }
  0x1e   :  { %579 = vmatpush.bf16.msra.mxu2 %v1150_v10  ;;  %v1146_v27 = vld [vmem:[#allocation5 + $0x88] sm:$0xff]  ;;  %v233_v29 = vunpack.c.l.b16 %v89_v26  ;;  %v234_v31 = vunpack.c.h.b16 %v89_v26  ;;  %v1145_v36 = vld [vmem:[#allocation5 + $0x80] sm:$0xff]  ;;  %v235_v37 = vunpack.c.l.b16 %v90_v28  ;;  %v236_v40 = vunpack.c.h.b16 %v90_v28  ;;  %v1167_v43 = vld [vmem:[#allocation5 + $0x130] sm:$0xff] }
  0x1f   :  { %592 = vmatpush.bf16.msra.mxu3 %v1158_v11  ;;  %v1154_v30 = vld [vmem:[#allocation5 + $0xc8] sm:$0xff]  ;;  %v1153_v41 = vld [vmem:[#allocation5 + $0xc0] sm:$0xff]  ;;  %v1175_v44 = vld [vmem:[#allocation5 + $0x170] sm:$0xff] }
  0x20   :  { %554 = vmatpush.bf16.msra.mxu0 %v1133_v12  ;;  %v240_v38 = vpack.c.b16 %v233_v29, %v233_v29  ;;  %v241_v39 = vpack.c.b16 %v234_v31, %v234_v31  ;;  %v1177_v42 = vld [vmem:[#allocation5 + $0x180] sm:$0xff]  ;;  %v242_v45 = vpack.c.b16 %v235_v37, %v235_v37  ;;  %v243_v46 = vpack.c.b16 %v236_v40, %v236_v40  ;;  %v1166_v47 = vld [vmem:[#allocation5 + $0x128] sm:$0xff]  ;;  %v92_v51 = vld [vmem:[#allocation2 + $0x18] sm:$0xf] }
  0x21   :  { %567 = vmatpush.bf16.msra.mxu1 %v1141_v13  ;;  %v1174_v48 = vld [vmem:[#allocation5 + $0x168] sm:$0xff]  ;;  %v1165_v49 = vld [vmem:[#allocation5 + $0x120] sm:$0xff]  ;;  %v1164_v52 = vld [vmem:[#allocation5 + $0x118] sm:$0xff]  ;;  %v239_v54 = vunpack.c.l.b16 %v92_v51 }
  0x22   :  { %580 = vmatpush.bf16.msra.mxu2 %v1149_v14  ;;  %v1173_v50 = vld [vmem:[#allocation5 + $0x160] sm:$0xff]  ;;  %v1172_v53 = vld [vmem:[#allocation5 + $0x158] sm:$0xff]  ;;  %v1163_v55 = vld [vmem:[#allocation5 + $0x110] sm:$0xff] }
  0x23   :  { %593 = vmatpush.bf16.msra.mxu3 %v1157_v15  ;;  %v1171_v56 = vld [vmem:[#allocation5 + $0x150] sm:$0xff]  ;;  %v246_v57 = vpack.c.b16 %v239_v54, %v239_v54  ;;  %v1162_v58 = vld [vmem:[#allocation5 + $0x108] sm:$0xff]  ;;  %v1161_v63 = vld [vmem:[#allocation5 + $0x100] sm:$0xff] }
  0x24   :  { %555 = vmatpush.bf16.msra.mxu0 %v1132_v16  ;;  %v1170_v59 = vld [vmem:[#allocation5 + $0x148] sm:$0xff]  ;;  %v91_v60 = vld [vmem:[#allocation2 + $0x10] sm:$0xff]  ;;  %v1169_v0 = vld [vmem:[#allocation5 + $0x140] sm:$0xff] }
  0x25   :  { %568 = vmatpush.bf16.msra.mxu1 %v1140_v17  ;;  %v237_v61 = vunpack.c.l.b16 %v91_v60  ;;  %v238_v62 = vunpack.c.h.b16 %v91_v60  ;;  %v1201_v9 = vld [vmem:[%s1413_s2] ss:$0 sm:$0xff]  ;;  %v1184_v12 = vld [vmem:[#allocation7 + $0x30] sm:$0xff]  ;;  %v1183_v16 = vld [vmem:[#allocation7 + $0x28] sm:$0xff] }
  0x26   :  { %581 = vmatpush.bf16.msra.mxu2 %v1148_v18  ;;  %v1185_v10 = vld [vmem:[#allocation7 + $0x38] sm:$0xff]  ;;  %v1182_v18 = vld [vmem:[#allocation7 + $0x20] sm:$0xff]  ;;  %v1180_v26 = vld [vmem:[#allocation7 + $0x10] sm:$0xff] }
  0x27   :  { %594 = vmatpush.bf16.msra.mxu3 %v1156_v19  ;;  %v244_v1 = vpack.c.b16 %v237_v61, %v237_v61  ;;  %v245_v2 = vpack.c.b16 %v238_v62, %v238_v62  ;;  %v1179_v31 = vld [vmem:[#allocation7 + $0x8] sm:$0xff]  ;;  %v1193_v62 = vld [vmem:[#allocation8 + $0x38] sm:$0xff] }
  0x28   :  { %556 = vmatpush.bf16.msra.mxu0 %v1131_v20 }
  0x29   :  { %569 = vmatpush.bf16.msra.mxu1 %v1139_v21  ;;  %v1181_v21 = vld [vmem:[#allocation7 + $0x18] sm:$0xff] }
  0x2a   :  { %582 = vmatpush.bf16.msra.mxu2 %v1147_v22 }
  0x2b   :  { %595 = vmatpush.bf16.msra.mxu3 %v1155_v23 }
  0x2c   :  { %557 = vmatpush.bf16.msra.mxu0 %v1130_v24 }
  0x2d   :  { %570 = vmatpush.bf16.msra.mxu1 %v1138_v25 }
  0x2e   :  { %583 = vmatpush.bf16.msra.mxu2 %v1146_v27 }
  0x2f   :  { %596 = vmatpush.bf16.msra.mxu3 %v1154_v30 }
  0x30   :  { %558 = vmatpush.bf16.msra.mxu0 %v1129_v32 }
  0x31   :  { %571 = vmatpush.bf16.msra.mxu1 %v1137_v33 }
  0x32   :  { %584 = vmatpush.bf16.msra.mxu2 %v1145_v36 }
  0x33   :  { %559 = vmatmul.bf16.vlgmr.msra.gmra.mxu0 %v240_v38  ;;  %597 = vmatpush.bf16.msra.mxu3 %v1153_v41  ;;  %v1178_v38 = vld [vmem:[#allocation7] sm:$0xff] }
  0x34   :  { %603 = vmatpush.bf16.msrb.mxu0 %v1168_v34  ;;  %572 = vmatmul.bf16.vlgmr.msra.gmra.mxu1 %v241_v39 }
  0x35   :  { %616 = vmatpush.bf16.msrb.mxu1 %v1176_v35  ;;  %585 = vmatmul.bf16.vlgmr.msra.gmra.mxu2 %v242_v45 }
  0x36   :  { %636 = vmatpush.bf16.msrb.mxu2 %v1177_v42  ;;  %598 = vmatmul.bf16.vlgmr.msra.gmra.mxu3 %v243_v46 }
  0x37   :  { %725 = vmatpush.bf16.msrb.mxu3 %v1185_v10 }
  0x38   :  { %604 = vmatpush.bf16.msrb.mxu0 %v1167_v43 }
  0x39   :  { %617 = vmatpush.bf16.msrb.mxu1 %v1175_v44 }
  0x3a   :  { %820 = vmatpush.bf16.msra.mxu2 %v1193_v62 }
  0x3b   :  { %726 = vmatpush.bf16.msrb.mxu3 %v1184_v12  ;;  %v1186_v12 = vld [vmem:[#allocation8] sm:$0xff] }
  0x3c   :  { %605 = vmatpush.bf16.msrb.mxu0 %v1166_v47 }
  0x3d   :  { %618 = vmatpush.bf16.msrb.mxu1 %v1174_v48 }
  0x3f   :  { %727 = vmatpush.bf16.msrb.mxu3 %v1183_v16 }
  0x40   :  { %606 = vmatpush.bf16.msrb.mxu0 %v1165_v49 }
  0x41   :  { %619 = vmatpush.bf16.msrb.mxu1 %v1173_v50 }
  0x43   :  { %728 = vmatpush.bf16.msrb.mxu3 %v1182_v18 }
  0x44   :  { %607 = vmatpush.bf16.msrb.mxu0 %v1164_v52 }
  0x45   :  { %620 = vmatpush.bf16.msrb.mxu1 %v1172_v53  ;;  %1064 = vmatmul.msk.bf16.vlgmr.msrb.gmra.mxu2 %vm547_vm0, %v246_v57 }
  0x47   :  { %729 = vmatpush.bf16.msrb.mxu3 %v1181_v21 }
  0x48   :  { %608 = vmatpush.bf16.msrb.mxu0 %v1163_v55 }
  0x49   :  { %621 = vmatpush.bf16.msrb.mxu1 %v1171_v56 }
  0x4b   :  { %730 = vmatpush.bf16.msrb.mxu3 %v1180_v26 }
  0x4c   :  { %609 = vmatpush.bf16.msrb.mxu0 %v1162_v58 }
  0x4d   :  { %622 = vmatpush.bf16.msrb.mxu1 %v1170_v59 }
  0x4f   :  { %731 = vmatpush.bf16.msrb.mxu3 %v1179_v31 }
  0x50   :  { %610 = vmatpush.bf16.msrb.mxu0 %v1161_v63  ;;  %v1192_v63 = vld [vmem:[#allocation8 + $0x30] sm:$0xff] }
  0x51   :  { %623 = vmatpush.bf16.msrb.mxu1 %v1169_v0  ;;  %821 = vmatpush.bf16.msra.mxu2 %v1192_v63  ;;  %v1191_v0 = vld [vmem:[#allocation8 + $0x28] sm:$0xff] }
  0x53   :  { %611 = vmatmul.bf16.vlgmr.msrb.gmra.mxu0 %v244_v1  ;;  %732 = vmatpush.bf16.msrb.mxu3 %v1178_v38  ;;  %v1190_v1 = vld [vmem:[#allocation8 + $0x20] sm:$0xff]  ;;  %v833_v38 = vlaneseq }
  0x54   :  { %624 = vmatmul.bf16.vlgmr.msrb.gmra.mxu1 %v245_v2  ;;  %v1189_v2 = vld [vmem:[#allocation8 + $0x18] sm:$0xff] }
  0x55   :  { %822 = vmatpush.bf16.msra.mxu2 %v1191_v0 }
  0x59   :  { %823 = vmatpush.bf16.msra.mxu2 %v1190_v1 }
  0x5d   :  { %824 = vmatpush.bf16.msra.mxu2 %v1189_v2 }
  0xb0   :  { %v560_v3 = vpop.f32.mrf.mxu0 }
  0xb1   :  { %v573_v4 = vpop.f32.mrf.mxu1  ;;  %v561_v11 = vadd.f32 %v1201_v9, %v560_v3  ;;  %v1202_v3 = vld [vmem:[%s1415_s4] ss:$0 sm:$0xff] }
  0xb3   :  { %v574_v15 = vadd.f32 %v573_v4, %v561_v11  ;;  %v1188_v4 = vld [vmem:[#allocation8 + $0x10] sm:$0xff] }
  0xb4   :  { %825 = vmatpush.bf16.msra.mxu2 %v1188_v4 }
  0xb8   :  { %v562_v5 = vpop.f32.mrf.mxu0  ;;  %v586_v7 = vpop.f32.mrf.mxu2 }
  0xb9   :  { %v575_v6 = vpop.f32.mrf.mxu1  ;;  %v599_v8 = vpop.f32.mrf.mxu3  ;;  %v587_v17 = vadd.f32 %v586_v7, %v574_v15  ;;  %v1187_v7 = vld [vmem:[#allocation8 + $0x8] sm:$0xff] }
  0xba   :  { %826 = vmatpush.bf16.msra.mxu2 %v1187_v7 }
  0xbb   :  { %v600_v20 = vadd.f32 %v599_v8, %v587_v17 }
  0xbe   :  { %827 = vmatpush.bf16.msra.mxu2 %v1186_v12 }
  0xc0   :  { %v588_v13 = vpop.f32.mrf.mxu2 }
  0xc1   :  { %v601_v14 = vpop.f32.mrf.mxu3 }
  0xc8   :  { %v638_v19 = vpop.f32.mrf.mxu2 }
  0xd0   :  { %v612_v22 = vpop.f32.mrf.mxu0  ;;  %v640_v27 = vpop.f32.mrf.mxu2 }
  0xd1   :  { %v625_v23 = vpop.f32.mrf.mxu1  ;;  %v613_v24 = vadd.f32 %v612_v22, %v600_v20 }
  0xd3   :  { %v626_v25 = vadd.f32 %v625_v23, %v613_v24 }
  0xd5   :  { %v639_v28 = vadd.f32 %v638_v19, %v626_v25 }
  0xd7   :  { %v642_v29 = vrot.slane %v639_v28, 4  ;;  %v649_v30 = vmul.f32 %v639_v28, %v639_v28 }
  0xd8   :  { %v614_v32 = vpop.f32.mrf.mxu0 }
  0xd9   :  { %v627_v33 = vpop.f32.mrf.mxu1  ;;  %v643_v34 = vadd.f32 %v642_v29, %v639_v28  ;;  %v650_v35 = vrot.slane %v649_v30, 4 }
  0xdb   :  { %v644_v36 = vrot.slane %v643_v34, 2  ;;  %v651_v37 = vadd.f32 %v650_v35, %v649_v30 }
  0xdd   :  { %v652_v39 = vrot.slane %v651_v37, 2  ;;  %v645_v40 = vadd.f32 %v644_v36, %v643_v34 }
  0xdf   :  { %v653_v41 = vadd.f32 %v652_v39, %v651_v37  ;;  %v646_v42 = vrot.slane %v645_v40, 1  ;;  %v834_v39 = vand.u32 127, %v833_v38 }
  0xe1   :  { %v654_v43 = vrot.slane %v653_v41, 1  ;;  %v647_v44 = vadd.f32 %v646_v42, %v645_v40  ;;  %v1203_v40 = vld [vmem:[%s1417_s6] ss:$0 sm:$0xff]  ;;  %vm835_vm7 = vcmp.lt.s32.totalorder %v834_v39, 10 }
  0xe3   :  { %v648_v45 = vmul.f32 0.125, %v647_v44  ;;  %v655_v46 = vadd.f32 %v654_v43, %v653_v41 }
  0xe5   :  { %v656_v47 = vmul.f32 0.125, %v655_v46  ;;  %v657_v48 = vmul.f32 %v648_v45, %v648_v45  ;;  %v659_v57 = vsub.f32 %v639_v28, %v648_v45 }
  0xe7   :  { %v658_v49 = vsub.f32 %v656_v47, %v657_v48 }
  0xe9   :  { %v660_v50 = vadd.f32 1e-05, %v658_v49 }
  0xeb   :  { %1204 = vrsqrt.f32 %v660_v50  ;;  %vm667_vm2 = vweird.f32 %v660_v50 }
  0xf1   :  { %v1205_v51 = vpop.eup %1204 }
  0xf2   :  { %v662_v52 = vmul.f32 %v1205_v51, %v660_v50  ;;  %vm668_vm1 = vweird.f32 %v1205_v51 }
  0xf3   :  { %vm669_vm3 = vmor %vm667_vm2, %vm668_vm1 }
  0xf4   :  { %v663_v53 = vmul.f32 %v1205_v51, %v662_v52 }
  0xf6   :  { %v664_v54 = vmul.f32 0.5, %v663_v53 }
  0xf8   :  { %v665_v55 = vsub.f32 1.5, %v664_v54 }
  0xfa   :  { %v666_v56 = vmul.f32 %v1205_v51, %v665_v55 }
  0xfc   :  { %v670_v58 = vsel %vm669_vm3, %v1205_v51, %v666_v56 }
  0xfd   :  { %v671_v59 = vmul.f32 %v670_v58, %v659_v57 }
  0xff   :  { %v672_v60 = vmax.f32 %v671_v59, 0.0 }
 0x101   :  { %v673_v61 = vpack.c.bf16 %v672_v60, %v672_v60 }
 0x103   :  { %733 = vmatmul.bf16.vlgmr.msrb.gmra.mxu3 %v673_v61 }
 0x186   :  { %v734_v5 = vpop.f32.mrf.mxu3 }
 0x187   :  { %v735_v6 = vadd.f32 %v1202_v3, %v734_v5 }
 0x189   :  { %v738_v8 = vrot.slane %v735_v6, 4  ;;  %v745_v9 = vmul.f32 %v735_v6, %v735_v6 }
 0x18b   :  { %v739_v10 = vadd.f32 %v738_v8, %v735_v6  ;;  %v746_v11 = vrot.slane %v745_v9, 4 }
 0x18d   :  { %v740_v13 = vrot.slane %v739_v10, 2  ;;  %v747_v14 = vadd.f32 %v746_v11, %v745_v9 }
 0x18e   :  { %v736_v15 = vpop.f32.mrf.mxu3 }
 0x18f   :  { %v741_v16 = vadd.f32 %v740_v13, %v739_v10  ;;  %v748_v17 = vrot.slane %v747_v14, 2 }
 0x191   :  { %v742_v18 = vrot.slane %v741_v16, 1  ;;  %v749_v19 = vadd.f32 %v748_v17, %v747_v14 }
 0x193   :  { %v743_v20 = vadd.f32 %v742_v18, %v741_v16  ;;  %v750_v21 = vrot.slane %v749_v19, 1 }
 0x195   :  { %v744_v22 = vmul.f32 0.125, %v743_v20  ;;  %v751_v23 = vadd.f32 %v750_v21, %v749_v19 }
 0x197   :  { %v752_v24 = vmul.f32 0.125, %v751_v23  ;;  %v753_v25 = vmul.f32 %v744_v22, %v744_v22  ;;  %v755_v34 = vsub.f32 %v735_v6, %v744_v22 }
 0x199   :  { %v754_v26 = vsub.f32 %v752_v24, %v753_v25 }
 0x19b   :  { %v756_v27 = vadd.f32 1e-05, %v754_v26 }
 0x19d   :  { %1206 = vrsqrt.f32 %v756_v27  ;;  %vm763_vm5 = vweird.f32 %v756_v27 }
 0x1a3   :  { %v1207_v28 = vpop.eup %1206 }
 0x1a4   :  { %v758_v29 = vmul.f32 %v1207_v28, %v756_v27  ;;  %vm764_vm4 = vweird.f32 %v1207_v28 }
 0x1a5   :  { %vm765_vm6 = vmor %vm763_vm5, %vm764_vm4 }
 0x1a6   :  { %v759_v30 = vmul.f32 %v1207_v28, %v758_v29 }
 0x1a8   :  { %v760_v31 = vmul.f32 0.5, %v759_v30 }
 0x1aa   :  { %v761_v32 = vsub.f32 1.5, %v760_v31 }
 0x1ac   :  { %v762_v33 = vmul.f32 %v1207_v28, %v761_v32 }
 0x1ae   :  { %v766_v35 = vsel %vm765_vm6, %v1207_v28, %v762_v33 }
 0x1af   :  { %v767_v36 = vmul.f32 %v766_v35, %v755_v34 }
 0x1b1   :  { %v768_v37 = vpack.c.bf16 %v767_v36, %v767_v36 }
 0x1b3   :  { %828 = vmatmul.bf16.vlgmr.msra.gmra.mxu2 %v768_v37 }
 0x236   :  { %v829_v41 = vpop.f32.mrf.mxu2 }
 0x237   :  { %v830_v42 = vadd.f32 %v1203_v40, %v829_v41 }
 0x239   :  { %v836_v43 = vsel %vm835_vm7, %v830_v42, -1e+30 }
 0x23a   :  { %837 = vmax.xlane.f32.xlu0 %v836_v43 }
 0x23e   :  { %v831_v44 = vpop.f32.mrf.mxu2 }
 0x2ad   :  { %v838_v45 = vpop.xlane.xlu0 %837 }
 0x2ae   :  { %v839_v46 = vsub.f32 %v836_v43, %v838_v45 }
 0x2b0   :  { %v840_v47 = vmul.f32 1.442695, %v839_v46 }
 0x2b2   :  { %1208 = vpow2.f32 %v840_v47 }
 0x2b8   :  { %v1209_v48 = vpop.eup %1208 }
 0x2b9   :  { %v842_v49 = vsel %vm835_vm7, %v1209_v48, 0.0 }
 0x2ba   :  { %843 = vadd.xlane.f32.xlu0 %v842_v49 }
 0x32d   :  { %v844_v50 = vpop.xlane.xlu0 %843 }
 0x32e   :  { %1210 = vlog2.f32 %v844_v50 }
 0x334   :  { %v1211_v51 = vpop.eup %1210 }
 0x335   :  { %v846_v52 = vmul.f32 0.6931472, %v1211_v51 }
 0x337   :  { %v847_v53 = vsub.f32 %v839_v46, %v846_v52 }
 0x339   :  { %848 = vst [vmem:[#allocation10] sm:$0xff] %v847_v53 }
 0x33a   :  { %859 = dma.vmem_to_hbm [thread:$0]  %s855_s24, 128, %s857_s26, [#allocation4]  }
 0x33b   :  { %1338 = dma.done.wait [#allocation4], 128  }
 0x33c   :  { %1339 = vsyncadd [#allocation4], 4294967168 }
 0x33d   :  { %864 = vsyncpa [#allocation3], 1 }
 0x33e   :  { %865 = vsyncpa [#allocation6], 1 }
 0x33f   :  { %866 = vsyncpa [#allocation9], 1 }
 0x340   :  { %867 = vsyncpa [#allocation4], 1 }

</bundles_post_ra>
